<compile_context>
chip_gen: v5e
topology: v5e:2x2
jax: 0.10.0
libtpu: 0.0.40
codegen_flags: <defaults>
</compile_context>

<pallas_src>
import functools

import jax
import jax.numpy as jnp
from jax.experimental import pallas as pl
from jax.experimental.pallas import tpu as pltpu

# Number of DMAs kept in flight for the HBM->HBM copy path.
_N_DMA_CHUNKS = 4


def _lane_dense_2d(total_rows, d):
    """Pick a lane-dense (rows, cols) view of the contiguous flat buffer.

    A copy is element-order agnostic on contiguous bytes, so when D is not a
    multiple of 128 we reinterpret the flat buffer with a wide lane dimension
    (large multiple of 128) to keep DMA rows wide and dense.
    """
    if d % 128 == 0:
        return total_rows, d
    total = total_rows * d
    for w in (4096, 2048, 1024, 512, 256, 128):
        if total % w == 0:
            return total // w, w
    # Fallback: DMA still handles narrow rows, just less efficiently.
    return total_rows, d


def _chunk_bounds(rows):
    """Static (start, size) row chunks; starts sublane-aligned when possible."""
    n = max(1, min(_N_DMA_CHUNKS, rows))
    base = -(-rows // n)  # ceil division
    if rows >= 8 and base % 8:
        base = (base + 7) // 8 * 8
    bounds = []
    start = 0
    while start < rows:
        size = min(base, rows - start)
        bounds.append((start, size))
        start += size
    return tuple(bounds)


def _dma_copy_kernel(x_hbm, o_hbm, sem, *, chunk_bounds):
    # Direct HBM->HBM copy: issue all chunks, then wait.  No VMEM round trip,
    # no vreg pressure, no ~0.35us-per-grid-step pipeline overhead.
    copies = []
    for k, (start, size) in enumerate(chunk_bounds):
        cp = pltpu.make_async_copy(
            x_hbm.at[pl.ds(start, size)],
            o_hbm.at[pl.ds(start, size)],
            sem.at[k],
        )
        cp.start()
        copies.append(cp)
    for cp in copies:
        cp.wait()


def _materialize_copy(x2d):
    """Bitwise copy of a 2-D array into a fresh buffer via HBM->HBM DMA."""
    rows, cols = x2d.shape
    bounds = _chunk_bounds(rows)
    itemsize = jnp.dtype(x2d.dtype).itemsize
    kernel = functools.partial(_dma_copy_kernel, chunk_bounds=bounds)
    return pl.pallas_call(
        kernel,
        out_shape=jax.ShapeDtypeStruct((rows, cols), x2d.dtype),
        in_specs=[pl.BlockSpec(memory_space=pl.ANY)],
        out_specs=pl.BlockSpec(memory_space=pl.ANY),
        scratch_shapes=[pltpu.SemaphoreType.DMA((len(bounds),))],
        # Pure memory traffic: tell XLA's scheduler so it overlaps correctly.
        cost_estimate=pl.CostEstimate(
            flops=0,
            transcendentals=0,
            bytes_accessed=2 * rows * cols * itemsize,
        ),
    )(x2d)


def replicate_compute(x_shards, *, needs_fresh_buffer=False):
    """Materialize the replicated local tensor from the stacked dp shards.

    x_shards: [num_shards, shard_rows, D]  (dp mesh size = num_shards, tensor
              sharded on its leading row dimension).
    returns:  [num_shards * shard_rows, D] replicated tensor; shard i occupies
              rows [i*shard_rows, (i+1)*shard_rows).

    needs_fresh_buffer=False: the gather is a metadata-only reshape of the
    contiguous stacked shards — zero data movement.
    needs_fresh_buffer=True: additionally write a distinct output buffer
    (the all-gather destination) via a single HBM->HBM DMA copy.
    """
    num_shards, shard_rows, d = x_shards.shape
    total_rows = num_shards * shard_rows

    x_flat = x_shards.reshape(total_rows, d)
    if not needs_fresh_buffer:
        return x_flat

    rows, cols = _lane_dense_2d(total_rows, d)
    out2d = _materialize_copy(x_flat.reshape(rows, cols))
    return out2d.reshape(total_rows, d)


def replicate_computation_forward(
    x_shards, active_parametrization=False, needs_fresh_buffer=True
):
    """Forward of ReplicateComputation.

    Inactive parametrization: identity (x returned as-is, rank/shape unchanged
    — mirrors the PyTorch module, which also returns x untouched there).
    Active: produce the replicated (all-gathered) local tensor.
    """
    if not active_parametrization:
        return x_shards
    return replicate_compute(x_shards, needs_fresh_buffer=needs_fresh_buffer)


if __name__ == "__main__":
    key = jax.random.PRNGKey(0)
    num_shards = 4    # simulated dp mesh size
    shard_rows = 8
    d = 128
    x_shards = jax.random.normal(
        key, (num_shards, shard_rows, d), dtype=jnp.float32
    )
    ref = x_shards.reshape(num_shards * shard_rows, d)

    # 1) Inactive parametrization: forward is identity.
    y_id = jax.block_until_ready(
        replicate_computation_forward(x_shards, active_parametrization=False)
    )
    assert y_id.shape == x_shards.shape
    assert bool(jnp.array_equal(y_id, x_shards))

    # 2) Active, no fresh buffer required: gather is a free reshape (no kernel).
    y_fast = jax.block_until_ready(
        replicate_computation_forward(
            x_shards, active_parametrization=True, needs_fresh_buffer=False
        )
    )
    assert y_fast.shape == ref.shape
    assert bool(jnp.array_equal(y_fast, ref))

    # 3) Active, fresh buffer required: Pallas HBM->HBM DMA copy kernel.
    y_rep = jax.block_until_ready(
        replicate_computation_forward(
            x_shards, active_parametrization=True, needs_fresh_buffer=True
        )
    )
    assert y_rep.shape == (num_shards * shard_rows, d)
    assert bool(jnp.array_equal(y_rep, ref))

    # 4) Non-128-multiple feature dim exercises the lane-dense repack path.
    key2 = jax.random.PRNGKey(0)
    x_narrow = jax.random.normal(key2, (num_shards, shard_rows, 96), jnp.float32)
    ref_narrow = x_narrow.reshape(num_shards * shard_rows, 96)
    y_narrow = jax.block_until_ready(
        replicate_computation_forward(
            x_narrow, active_parametrization=True, needs_fresh_buffer=True
        )
    )
    assert y_narrow.shape == ref_narrow.shape
    assert bool(jnp.array_equal(y_narrow, ref_narrow))

    print("KERNEL_OK")
</pallas_src>

<mosaic_0001>
module attributes {stable_mosaic.version = 11 : i64} {
  func.func @_dma_copy_kernel(%arg0: memref<32x128xf32, #tpu.memory_space<any>>, %arg1: memref<32x128xf32, #tpu.memory_space<any>>, %arg2: memref<4x!tpu.dma_semaphore, #tpu.memory_space<semaphore_mem>>) attributes {dimension_semantics = [], scalar_prefetch = 0 : i64, scratch_operands = 1 : i64, tpu.core_type = #tpu.core_type<tc>} {
    %c0_i32 = arith.constant 0 : i32
    %c0_i32_0 = arith.constant 0 : i32
    %c0_i32_1 = arith.constant 0 : i32
    %0 = tpu.memref_slice %arg0[%c0_i32_0, %c0_i32_1] : memref<32x128xf32, #tpu.memory_space<any>> -> memref<8x128xf32, #tpu.memory_space<any>>
    %c0_i32_2 = arith.constant 0 : i32
    %c0_i32_3 = arith.constant 0 : i32
    %1 = tpu.memref_slice %arg1[%c0_i32_2, %c0_i32_3] : memref<32x128xf32, #tpu.memory_space<any>> -> memref<8x128xf32, #tpu.memory_space<any>>
    %2 = tpu.memref_slice %arg2[%c0_i32] : memref<4x!tpu.dma_semaphore, #tpu.memory_space<semaphore_mem>> -> memref<1x!tpu.dma_semaphore, #tpu.memory_space<semaphore_mem>>
    %3 = tpu.memref_squeeze %2 : memref<1x!tpu.dma_semaphore, #tpu.memory_space<semaphore_mem>> -> memref<!tpu.dma_semaphore, #tpu.memory_space<semaphore_mem>>
    tpu.enqueue_dma source(%0 : memref<8x128xf32, #tpu.memory_space<any>>) target(%1 : memref<8x128xf32, #tpu.memory_space<any>>) target_semaphore(%3 : memref<!tpu.dma_semaphore, #tpu.memory_space<semaphore_mem>>)
    %c1_i32 = arith.constant 1 : i32
    %c8_i32 = arith.constant 8 : i32
    %c0_i32_4 = arith.constant 0 : i32
    %4 = tpu.memref_slice %arg0[%c8_i32, %c0_i32_4] : memref<32x128xf32, #tpu.memory_space<any>> -> memref<8x128xf32, #tpu.memory_space<any>>
    %c8_i32_5 = arith.constant 8 : i32
    %c0_i32_6 = arith.constant 0 : i32
    %5 = tpu.memref_slice %arg1[%c8_i32_5, %c0_i32_6] : memref<32x128xf32, #tpu.memory_space<any>> -> memref<8x128xf32, #tpu.memory_space<any>>
    %6 = tpu.memref_slice %arg2[%c1_i32] : memref<4x!tpu.dma_semaphore, #tpu.memory_space<semaphore_mem>> -> memref<1x!tpu.dma_semaphore, #tpu.memory_space<semaphore_mem>>
    %7 = tpu.memref_squeeze %6 : memref<1x!tpu.dma_semaphore, #tpu.memory_space<semaphore_mem>> -> memref<!tpu.dma_semaphore, #tpu.memory_space<semaphore_mem>>
    tpu.enqueue_dma source(%4 : memref<8x128xf32, #tpu.memory_space<any>>) target(%5 : memref<8x128xf32, #tpu.memory_space<any>>) target_semaphore(%7 : memref<!tpu.dma_semaphore, #tpu.memory_space<semaphore_mem>>)
    %c2_i32 = arith.constant 2 : i32
    %c16_i32 = arith.constant 16 : i32
    %c0_i32_7 = arith.constant 0 : i32
    %8 = tpu.memref_slice %arg0[%c16_i32, %c0_i32_7] : memref<32x128xf32, #tpu.memory_space<any>> -> memref<8x128xf32, #tpu.memory_space<any>>
    %c16_i32_8 = arith.constant 16 : i32
    %c0_i32_9 = arith.constant 0 : i32
    %9 = tpu.memref_slice %arg1[%c16_i32_8, %c0_i32_9] : memref<32x128xf32, #tpu.memory_space<any>> -> memref<8x128xf32, #tpu.memory_space<any>>
    %10 = tpu.memref_slice %arg2[%c2_i32] : memref<4x!tpu.dma_semaphore, #tpu.memory_space<semaphore_mem>> -> memref<1x!tpu.dma_semaphore, #tpu.memory_space<semaphore_mem>>
    %11 = tpu.memref_squeeze %10 : memref<1x!tpu.dma_semaphore, #tpu.memory_space<semaphore_mem>> -> memref<!tpu.dma_semaphore, #tpu.memory_space<semaphore_mem>>
    tpu.enqueue_dma source(%8 : memref<8x128xf32, #tpu.memory_space<any>>) target(%9 : memref<8x128xf32, #tpu.memory_space<any>>) target_semaphore(%11 : memref<!tpu.dma_semaphore, #tpu.memory_space<semaphore_mem>>)
    %c3_i32 = arith.constant 3 : i32
    %c24_i32 = arith.constant 24 : i32
    %c0_i32_10 = arith.constant 0 : i32
    %12 = tpu.memref_slice %arg0[%c24_i32, %c0_i32_10] : memref<32x128xf32, #tpu.memory_space<any>> -> memref<8x128xf32, #tpu.memory_space<any>>
    %c24_i32_11 = arith.constant 24 : i32
    %c0_i32_12 = arith.constant 0 : i32
    %13 = tpu.memref_slice %arg1[%c24_i32_11, %c0_i32_12] : memref<32x128xf32, #tpu.memory_space<any>> -> memref<8x128xf32, #tpu.memory_space<any>>
    %14 = tpu.memref_slice %arg2[%c3_i32] : memref<4x!tpu.dma_semaphore, #tpu.memory_space<semaphore_mem>> -> memref<1x!tpu.dma_semaphore, #tpu.memory_space<semaphore_mem>>
    %15 = tpu.memref_squeeze %14 : memref<1x!tpu.dma_semaphore, #tpu.memory_space<semaphore_mem>> -> memref<!tpu.dma_semaphore, #tpu.memory_space<semaphore_mem>>
    tpu.enqueue_dma source(%12 : memref<8x128xf32, #tpu.memory_space<any>>) target(%13 : memref<8x128xf32, #tpu.memory_space<any>>) target_semaphore(%15 : memref<!tpu.dma_semaphore, #tpu.memory_space<semaphore_mem>>)
    %c0_i32_13 = arith.constant 0 : i32
    %c0_i32_14 = arith.constant 0 : i32
    %c0_i32_15 = arith.constant 0 : i32
    %16 = tpu.memref_slice %arg0[%c0_i32_14, %c0_i32_15] : memref<32x128xf32, #tpu.memory_space<any>> -> memref<8x128xf32, #tpu.memory_space<any>>
    %c0_i32_16 = arith.constant 0 : i32
    %c0_i32_17 = arith.constant 0 : i32
    %17 = tpu.memref_slice %arg1[%c0_i32_16, %c0_i32_17] : memref<32x128xf32, #tpu.memory_space<any>> -> memref<8x128xf32, #tpu.memory_space<any>>
    %18 = tpu.memref_slice %arg2[%c0_i32_13] : memref<4x!tpu.dma_semaphore, #tpu.memory_space<semaphore_mem>> -> memref<1x!tpu.dma_semaphore, #tpu.memory_space<semaphore_mem>>
    %19 = tpu.memref_squeeze %18 : memref<1x!tpu.dma_semaphore, #tpu.memory_space<semaphore_mem>> -> memref<!tpu.dma_semaphore, #tpu.memory_space<semaphore_mem>>
    tpu.wait_dma2 semaphore(%19 : memref<!tpu.dma_semaphore, #tpu.memory_space<semaphore_mem>>) src(%16 : memref<8x128xf32, #tpu.memory_space<any>>) dst(%17 : memref<8x128xf32, #tpu.memory_space<any>>)
    %c1_i32_18 = arith.constant 1 : i32
    %c8_i32_19 = arith.constant 8 : i32
    %c0_i32_20 = arith.constant 0 : i32
    %20 = tpu.memref_slice %arg0[%c8_i32_19, %c0_i32_20] : memref<32x128xf32, #tpu.memory_space<any>> -> memref<8x128xf32, #tpu.memory_space<any>>
    %c8_i32_21 = arith.constant 8 : i32
    %c0_i32_22 = arith.constant 0 : i32
    %21 = tpu.memref_slice %arg1[%c8_i32_21, %c0_i32_22] : memref<32x128xf32, #tpu.memory_space<any>> -> memref<8x128xf32, #tpu.memory_space<any>>
    %22 = tpu.memref_slice %arg2[%c1_i32_18] : memref<4x!tpu.dma_semaphore, #tpu.memory_space<semaphore_mem>> -> memref<1x!tpu.dma_semaphore, #tpu.memory_space<semaphore_mem>>
    %23 = tpu.memref_squeeze %22 : memref<1x!tpu.dma_semaphore, #tpu.memory_space<semaphore_mem>> -> memref<!tpu.dma_semaphore, #tpu.memory_space<semaphore_mem>>
    tpu.wait_dma2 semaphore(%23 : memref<!tpu.dma_semaphore, #tpu.memory_space<semaphore_mem>>) src(%20 : memref<8x128xf32, #tpu.memory_space<any>>) dst(%21 : memref<8x128xf32, #tpu.memory_space<any>>)
    %c2_i32_23 = arith.constant 2 : i32
    %c16_i32_24 = arith.constant 16 : i32
    %c0_i32_25 = arith.constant 0 : i32
    %24 = tpu.memref_slice %arg0[%c16_i32_24, %c0_i32_25] : memref<32x128xf32, #tpu.memory_space<any>> -> memref<8x128xf32, #tpu.memory_space<any>>
    %c16_i32_26 = arith.constant 16 : i32
    %c0_i32_27 = arith.constant 0 : i32
    %25 = tpu.memref_slice %arg1[%c16_i32_26, %c0_i32_27] : memref<32x128xf32, #tpu.memory_space<any>> -> memref<8x128xf32, #tpu.memory_space<any>>
    %26 = tpu.memref_slice %arg2[%c2_i32_23] : memref<4x!tpu.dma_semaphore, #tpu.memory_space<semaphore_mem>> -> memref<1x!tpu.dma_semaphore, #tpu.memory_space<semaphore_mem>>
    %27 = tpu.memref_squeeze %26 : memref<1x!tpu.dma_semaphore, #tpu.memory_space<semaphore_mem>> -> memref<!tpu.dma_semaphore, #tpu.memory_space<semaphore_mem>>
    tpu.wait_dma2 semaphore(%27 : memref<!tpu.dma_semaphore, #tpu.memory_space<semaphore_mem>>) src(%24 : memref<8x128xf32, #tpu.memory_space<any>>) dst(%25 : memref<8x128xf32, #tpu.memory_space<any>>)
    %c3_i32_28 = arith.constant 3 : i32
    %c24_i32_29 = arith.constant 24 : i32
    %c0_i32_30 = arith.constant 0 : i32
    %28 = tpu.memref_slice %arg0[%c24_i32_29, %c0_i32_30] : memref<32x128xf32, #tpu.memory_space<any>> -> memref<8x128xf32, #tpu.memory_space<any>>
    %c24_i32_31 = arith.constant 24 : i32
    %c0_i32_32 = arith.constant 0 : i32
    %29 = tpu.memref_slice %arg1[%c24_i32_31, %c0_i32_32] : memref<32x128xf32, #tpu.memory_space<any>> -> memref<8x128xf32, #tpu.memory_space<any>>
    %30 = tpu.memref_slice %arg2[%c3_i32_28] : memref<4x!tpu.dma_semaphore, #tpu.memory_space<semaphore_mem>> -> memref<1x!tpu.dma_semaphore, #tpu.memory_space<semaphore_mem>>
    %31 = tpu.memref_squeeze %30 : memref<1x!tpu.dma_semaphore, #tpu.memory_space<semaphore_mem>> -> memref<!tpu.dma_semaphore, #tpu.memory_space<semaphore_mem>>
    tpu.wait_dma2 semaphore(%31 : memref<!tpu.dma_semaphore, #tpu.memory_space<semaphore_mem>>) src(%28 : memref<8x128xf32, #tpu.memory_space<any>>) dst(%29 : memref<8x128xf32, #tpu.memory_space<any>>)
    return
  }
}

</mosaic_0001>

<bundles_post_ra>
// kernel: tpu_custom_call.1
= control target key start
LH: loop header
LB: loop body
LE: loop exit
PB: predicated region body
PF: predicated region fallthrough
CT: control target
= control target key end

     0   :  { %s116_s15 = smov [#allocation2]   ;;  %s117_s16 = smov [#allocation3]   ;;  %s163_s0 = inlined_call_operand.hbm [shape: f32[32,128], index: 0, kind: input, shape index: {}]   ;;  %s164_s1 = inlined_call_operand.hbm [shape: f32[32,128], index: 1, kind: output, shape index: {}]  }
   0x1   :  { %s10_s8 = sshll.u32 %s163_s0, 4  ;;  %s12_s11 = sshll.u32 %s164_s1, 4  ;;  %s11_s8 = int_to_ptr.hbm [resolvable:$true] %s10_s8  ;;  %s13_s11 = int_to_ptr.hbm [resolvable:$true] %s12_s11 }
   0x2   :  { %s17_s14 = scalar_lea.hbm %s163_s0, 8  ;;  %s118_s17 = smov 0  }
   0x3   :  { %16 = dma.general %s11_s8, 128, %s13_s11, %s116_s15, %s117_s16, [#allocation4], %s118_s17, 0  }
   0x4   :  { %s18_s20 = scalar_lea.hbm %s164_s1, 8  ;;  %s24_s21 = sshll.u32 %s17_s14, 4  ;;  %s25_s21 = int_to_ptr.hbm [resolvable:$true] %s24_s21 }
   0x5   :  { %s26_s22 = sshll.u32 %s18_s20, 4  ;;  %s31_s25 = scalar_lea.hbm %s163_s0, 16  ;;  %s27_s22 = int_to_ptr.hbm [resolvable:$true] %s26_s22 }
   0x6   :  { %s119_s26 = smov [#allocation2 + $0x1]   ;;  %s120_s27 = smov [#allocation5]  }
   0x7   :  { %30 = dma.general %s25_s21, 128, %s27_s22, %s119_s26, %s120_s27, [#allocation6], %s118_s17, 0  }
   0x8   :  { %s32_s30 = scalar_lea.hbm %s164_s1, 16  ;;  %s38_s2 = sshll.u32 %s31_s25, 4  ;;  %s39_s2 = int_to_ptr.hbm [resolvable:$true] %s38_s2 }
   0x9   :  { %s40_s3 = sshll.u32 %s32_s30, 4  ;;  %s45_s6 = scalar_lea.hbm %s163_s0, 24  ;;  %s41_s3 = int_to_ptr.hbm [resolvable:$true] %s40_s3 }
   0xa   :  { %s121_s7 = smov [#allocation2 + $0x2]   ;;  %s122_s8 = smov [#allocation7]  }
   0xb   :  { %44 = dma.general %s39_s2, 128, %s41_s3, %s121_s7, %s122_s8, [#allocation8], %s118_s17, 0  }
   0xc   :  { %s46_s11 = scalar_lea.hbm %s164_s1, 24  ;;  %s52_s12 = sshll.u32 %s45_s6, 4  ;;  %s53_s12 = int_to_ptr.hbm [resolvable:$true] %s52_s12 }
   0xd   :  { %s54_s13 = sshll.u32 %s46_s11, 4  ;;  %s123_s14 = smov [#allocation2 + $0x3]   ;;  %s55_s13 = int_to_ptr.hbm [resolvable:$true] %s54_s13 }
   0xe   :  { %s124_s15 = smov [#allocation9]  }
   0xf   :  { %58 = dma.general %s53_s12, 128, %s55_s13, %s123_s14, %s124_s15, [#allocation10], %s118_s17, 0  }
  0x10   :  { %108 = dma.done.wait [#allocation2], 128 }
  0x11   :  { %109 = vsyncadd [#allocation2], 4294967168 }
  0x12   :  { %110 = dma.done.wait [#allocation2 + $0x1], 128 }
  0x13   :  { %111 = vsyncadd [#allocation2 + $0x1], 4294967168 }
  0x14   :  { %112 = dma.done.wait [#allocation2 + $0x2], 128 }
  0x15   :  { %113 = vsyncadd [#allocation2 + $0x2], 4294967168 }
  0x16   :  { %114 = dma.done.wait [#allocation2 + $0x3], 128 }
  0x17   :  { %115 = vsyncadd [#allocation2 + $0x3], 4294967168 }
  0x18   :  { %68 = vsyncmov [#allocation2] }
  0x1b   :  { %s69_s0 = vpop.sfrf %68 }
  0x1c   :  { %p95_p0 = scmp.ne.s32.totalorder %s69_s0, 0 }
  0x1e   :  { %73 = shalt.err (%p95_p0)  }
  0x1f   :  { %75 = vsyncmov [#allocation2 + $0x1] }
  0x22   :  { %s76_s1 = vpop.sfrf %75 }
  0x23   :  { %p96_p1 = scmp.ne.s32.totalorder %s76_s1, 0 }
  0x25   :  { %80 = shalt.err (%p96_p1)  }
  0x26   :  { %82 = vsyncmov [#allocation2 + $0x2] }
  0x29   :  { %s83_s16 = vpop.sfrf %82 }
  0x2a   :  { %p97_p2 = scmp.ne.s32.totalorder %s83_s16, 0 }
  0x2c   :  { %87 = shalt.err (%p97_p2)  }
  0x2d   :  { %89 = vsyncmov [#allocation2 + $0x3] }
  0x30   :  { %s90_s17 = vpop.sfrf %89 }
  0x31   :  { %p98_p3 = scmp.ne.s32.totalorder %s90_s17, 0 }
  0x33   :  { %94 = shalt.err (%p98_p3)  }

</bundles_post_ra>
